<compile_context>
chip_gen: v5e
topology: v5e:2x2
jax: 0.10.0
libtpu: 0.0.40
codegen_flags: <defaults>
</compile_context>

<pallas_src>
import functools

import jax
import jax.numpy as jnp
from jax.experimental import pallas as pl
from jax.experimental.pallas import tpu as pltpu


_TARGET_TILE_BYTES = 4 * 1024 * 1024   # ~4 MiB input tile: amortizes per-step overhead
_VMEM_CAP_BYTES = 40 * 1024 * 1024     # stay well inside v7x's 64 MiB VMEM per TC


def _cdiv(a: int, b: int) -> int:
    return -(-a // b)


def _round_up(a: int, m: int) -> int:
    return _cdiv(a, m) * m


def _layernorm_kernel(params_ref, x_ref, o_ref, *, eps: float):
    # params_ref: SMEM (2,) = [alpha, bias] -- scalar reads hoisted above vector work.
    alpha = params_ref[0]
    bias = params_ref[1]

    x = x_ref[...].astype(jnp.float32)                        # (tile_rows, H) in f32
    h = x.shape[-1]

    mean = jnp.mean(x, axis=-1, keepdims=True)                # (tile_rows, 1)
    centered = x - mean
    # Unbiased variance (ddof=1), centered two-pass form (robust numerics).
    # h == 1 -> NaN, matching torch.std(unbiased=True) on a single element.
    inv_nm1 = (1.0 / (h - 1)) if h > 1 else float("nan")
    var = jnp.sum(centered * centered, axis=-1, keepdims=True) * inv_nm1
    std = jnp.sqrt(var)

    # One reciprocal per row (EUP) instead of a per-element divide; fold alpha in
    # so per-element work is a single multiply-add.
    inv = pl.reciprocal(std + eps, approx=False)              # (tile_rows, 1)
    scale = alpha * inv

    out_dtype = o_ref.dtype
    if jnp.dtype(out_dtype).itemsize == 2:
        # bf16/f16 inputs: reductions stayed f32 above, but the final elementwise
        # multiply-add runs natively in 16 bit (v6e/v7x VPUs are bf16-native;
        # harmless on v5e which upcasts anyway).
        o_ref[...] = (centered.astype(out_dtype) * scale.astype(out_dtype)
                      + bias.astype(out_dtype))
    else:
        o_ref[...] = (centered * scale + bias).astype(out_dtype)


def _pick_tile_rows(rows: int, h: int, itemsize: int) -> int:
    """Largest row tile near _TARGET_TILE_BYTES, multiple of the sublane pack,
    preferring an even grid-step count (v7x has 2 TensorCores)."""
    sub = 16 if itemsize == 2 else 8          # bf16 packs 16 rows/vreg, f32 packs 8
    per_row = max(1, h * itemsize)
    max_tile = max(sub, (_TARGET_TILE_BYTES // per_row) // sub * sub)

    if rows <= max_tile:
        if rows >= 4 * sub:
            # Big enough to split into 2 blocks so the "parallel" grid axis can
            # shard across both v7x TensorCores.
            return _round_up(_cdiv(rows, 2), sub)
        return rows                            # tiny: single full-extent block

    tile = max_tile
    steps = _cdiv(rows, tile)
    if steps % 2 == 1:                         # nudge to an even step count (v7x)
        t2 = max(sub, _round_up(_cdiv(rows, steps + 1), sub))
        if _cdiv(rows, t2) % 2 == 0:
            tile = t2
    return tile


def _vmem_need_bytes(tile_rows: int, h: int, itemsize: int, n_in_bufs: int) -> int:
    """Explicit VMEM budget: input buffers + 2 output buffers + ~2 f32
    intermediates (x, centered) + one out-dtype temp + compiler headroom."""
    t_in = tile_rows * h * itemsize
    t_f32 = tile_rows * h * 4
    return n_in_bufs * t_in + 2 * t_in + 2 * t_f32 + t_in + (4 << 20)


def layer_normalization(x: jax.Array, alpha: jax.Array, bias: jax.Array,
                        eps: float = 1e-5) -> jax.Array:
    """Pallas TPU implementation of the reference LayerNormalization.forward."""
    if alpha.size != 1 or bias.size != 1:
        raise ValueError("LayerNormalization expects scalar alpha/bias "
                         "(module defines nn.Parameter(torch.ones(1))).")

    orig_shape = x.shape
    h = orig_shape[-1]
    rows = 1
    for d in orig_shape[:-1]:
        rows *= d
    x2d = x.reshape(rows, h)

    itemsize = jnp.dtype(x.dtype).itemsize
    sub = 16 if itemsize == 2 else 8
    tile_rows = _pick_tile_rows(rows, h, itemsize)

    # Shrink the tile if the explicit budget would exceed the ~40 MiB cap.
    while tile_rows > sub and _vmem_need_bytes(tile_rows, h, itemsize, 2) > _VMEM_CAP_BYTES:
        tile_rows = max(sub, _round_up(tile_rows // 2, sub))

    num_steps = _cdiv(rows, tile_rows)        # ragged row count: last block masked

    # Short grids don't fully hide the first-step DMA ramp: request a third
    # input buffer when it still fits the VMEM budget.
    n_in_bufs = 2
    if 2 <= num_steps <= 4 and _vmem_need_bytes(tile_rows, h, itemsize, 3) <= _VMEM_CAP_BYTES:
        n_in_bufs = 3

    vmem_limit = int(min(max(_vmem_need_bytes(tile_rows, h, itemsize, n_in_bufs),
                             16 * 1024 * 1024),
                         100 * 1024 * 1024))

    params = jnp.stack([alpha.reshape(()), bias.reshape(())]).astype(jnp.float32)

    x_spec_kwargs = {}
    if n_in_bufs == 3:
        x_spec_kwargs["pipeline_mode"] = pl.Buffered(3)
    x_spec = pl.BlockSpec((tile_rows, h), lambda i: (i, 0), **x_spec_kwargs)

    out2d = pl.pallas_call(
        functools.partial(_layernorm_kernel, eps=eps),
        out_shape=jax.ShapeDtypeStruct((rows, h), x.dtype),
        grid=(num_steps,),
        in_specs=[
            pl.BlockSpec(memory_space=pltpu.SMEM),             # [alpha, bias]
            x_spec,                                            # x row tile
        ],
        out_specs=pl.BlockSpec((tile_rows, h), lambda i: (i, 0)),
        compiler_params=pltpu.CompilerParams(
            dimension_semantics=("parallel",),
            vmem_limit_bytes=vmem_limit,
        ),
    )(params, x2d)

    return out2d.reshape(orig_shape)


if __name__ == "__main__":
    key = jax.random.PRNGKey(0)
    B, S, H = 2, 8, 32
    x = jax.random.normal(key, (B, S, H), dtype=jnp.float32)

    # Deterministic parameter init matching nn.Parameter(torch.ones(1)).
    alpha = jnp.ones((1,), dtype=jnp.float32)
    bias = jnp.ones((1,), dtype=jnp.float32)

    out = layer_normalization(x, alpha, bias, eps=1e-5)
    jax.block_until_ready(out)

    # Pure-JAX reference (unbiased std, eps added to std), as in the PyTorch module.
    mean = jnp.mean(x, axis=-1, keepdims=True)
    std = jnp.sqrt(jnp.sum((x - mean) ** 2, axis=-1, keepdims=True) / (H - 1))
    ref = alpha[0] * (x - mean) / (std + 1e-5) + bias[0]
    assert jnp.allclose(out, ref, atol=1e-5, rtol=1e-5), "mismatch vs reference"

    print("KERNEL_OK")
</pallas_src>

<mosaic_0001>
module attributes {stable_mosaic.version = 11 : i64} {
  func.func @_layernorm_kernel(%arg0: i32, %arg1: memref<2xf32, #tpu.memory_space<smem>>, %arg2: memref<16x32xf32, #tpu.memory_space<vmem>>, %arg3: memref<16x32xf32, #tpu.memory_space<vmem>>) attributes {dimension_semantics = [#tpu.dimension_semantics<parallel>], iteration_bounds = array<i64: 1>, scalar_prefetch = 0 : i64, scratch_operands = 0 : i64, tpu.core_type = #tpu.core_type<tc>, window_params = [{transform_indices = @transform_0, window_bounds = array<i64: 2>}, {transform_indices = @transform_1, window_bounds = array<i64: 16, 32>}, {transform_indices = @transform_2, window_bounds = array<i64: 16, 32>}]} {
    %c0 = arith.constant 0 : index
    %0 = memref.load %arg1[%c0] : memref<2xf32, #tpu.memory_space<smem>>
    %c1 = arith.constant 1 : index
    %1 = memref.load %arg1[%c1] : memref<2xf32, #tpu.memory_space<smem>>
    %c0_0 = arith.constant 0 : index
    %c0_1 = arith.constant 0 : index
    %2 = vector.load %arg2[%c0_0, %c0_1] : memref<16x32xf32, #tpu.memory_space<vmem>>, vector<16x32xf32>
    %cst = arith.constant dense<0.000000e+00> : vector<16xf32>
    %3 = vector.multi_reduction <add>, %2, %cst [1] : vector<16x32xf32> to vector<16xf32>
    %4 = vector.shape_cast %3 : vector<16xf32> to vector<16x1xf32>
    %cst_2 = arith.constant 3.200000e+01 : f32
    %5 = vector.broadcast %cst_2 : f32 to vector<16x1xf32>
    %6 = arith.divf %4, %5 : vector<16x1xf32>
    %7 = vector.broadcast %6 : vector<16x1xf32> to vector<16x32xf32>
    %8 = arith.subf %2, %7 : vector<16x32xf32>
    %9 = arith.mulf %8, %8 : vector<16x32xf32>
    %cst_3 = arith.constant dense<0.000000e+00> : vector<16xf32>
    %10 = vector.multi_reduction <add>, %9, %cst_3 [1] : vector<16x32xf32> to vector<16xf32>
    %11 = vector.shape_cast %10 : vector<16xf32> to vector<16x1xf32>
    %cst_4 = arith.constant 0.0322580636 : f32
    %12 = vector.broadcast %cst_4 : f32 to vector<16x1xf32>
    %13 = arith.mulf %11, %12 : vector<16x1xf32>
    %14 = math.sqrt %13 : vector<16x1xf32>
    %cst_5 = arith.constant 9.99999974E-6 : f32
    %15 = vector.broadcast %cst_5 : f32 to vector<16x1xf32>
    %16 = arith.addf %14, %15 : vector<16x1xf32>
    %17 = tpu.reciprocal %16 : vector<16x1xf32> -> vector<16x1xf32>
    %18 = vector.broadcast %0 : f32 to vector<16x1xf32>
    %19 = arith.mulf %18, %17 : vector<16x1xf32>
    %20 = vector.broadcast %19 : vector<16x1xf32> to vector<16x32xf32>
    %21 = arith.mulf %8, %20 : vector<16x32xf32>
    %22 = vector.broadcast %1 : f32 to vector<16x32xf32>
    %23 = arith.addf %21, %22 : vector<16x32xf32>
    %c0_6 = arith.constant 0 : index
    %c0_7 = arith.constant 0 : index
    %24 = vector.load %arg3[%c0_6, %c0_7] : memref<16x32xf32, #tpu.memory_space<vmem>>, vector<16x32xf32>
    tpu.vector_store %arg3[%c0_6, %c0_7], %23 {strides = array<i32>} : memref<16x32xf32, #tpu.memory_space<vmem>>, vector<16x32xf32>,
    return
  }
  func.func @transform_0(%arg0: i32) -> i32 {
    %c0_i32 = arith.constant 0 : i32
    %c0_i32_0 = arith.constant 0 : i32
    return %c0_i32 : i32
  }
  func.func @transform_1(%arg0: i32) -> (i32, i32) {
    %c0_i32 = arith.constant 0 : i32
    %c0_i32_0 = arith.constant 0 : i32
    return %arg0, %c0_i32 : i32, i32
  }
  func.func @transform_2(%arg0: i32) -> (i32, i32) {
    %c0_i32 = arith.constant 0 : i32
    %c0_i32_0 = arith.constant 0 : i32
    return %arg0, %c0_i32 : i32, i32
  }
}

</mosaic_0001>

<bundles_post_ra>
// kernel: tpu_custom_call.1
= control target key start
LH: loop header
LB: loop body
LE: loop exit
PB: predicated region body
PF: predicated region fallthrough
CT: control target
= control target key end

     0   :  { %7 = vsyncpa [#allocation5], 0  ;;  %s298_s0 = inlined_call_operand.hbm [shape: f32[2], index: 0, kind: input, shape index: {}]   ;;  %s299_s1 = inlined_call_operand.hbm [shape: f32[16,32], index: 1, kind: input, shape index: {}]   ;;  %s300_s2 = inlined_call_operand.hbm [shape: f32[16,32], index: 2, kind: output, shape index: {}]  }
   0x1   :  { %8 = vsyncpa [#allocation3], 0 }
   0x2   :  { %9 = vsyncpa [#allocation4], 0  ;;  %s15_s11 = sshll.u32 %s298_s0, 4  ;;  %s23_s14 = sshll.u32 %s299_s1, 4  ;;  %s16_s11 = int_to_ptr.hbm [resolvable:$true] %s15_s11  ;;  %s24_s14 = int_to_ptr.hbm [resolvable:$true] %s23_s14 }
   0x3   :  { %s240_s15 = smov [#allocation2]   ;;  %s241_s16 = smov [#allocation6]  }
   0x4   :  { %18 = dma.hbm_to_smem %s16_s11, 16, %s240_s15, [#allocation5]  }
   0x5   :  { %s25_s17 = sshll.u32 %s241_s16, 4  ;;  %s242_s18 = smov 128   ;;  %s26_s17 = int_to_ptr.vmem [resolvable:$true] %s25_s17 }
   0x6   :  { %s243_s19 = smov 8  }
   0x7   :  { %31 = dma.hbm_to_vmem [thread:$0]  %s24_s14, 256, %s26_s17, [#allocation3], %s242_s18, %s242_s18, %s243_s19  }
   0x8   :  { %234 = dma.done.wait [#allocation5], 16  }
   0x9   :  { %235 = vsyncadd [#allocation5], 4294967280 }
   0xa   :  { %236 = dma.done.wait [#allocation3], 256  }
   0xb   :  { %237 = vsyncadd [#allocation3], 4294967040 }
   0xc   :  { %40 = sfence }
   0xd   :  { %v43_v0 = vld [vmem:[#allocation6] sm:$0xff]  ;;  %vm45_vm0 = vcmask 261120   ;;  %v44_v2 = vld [vmem:[#allocation6 + $0x8] sm:$0xff]  ;;  %v244_v4 = vmov 32.0   ;;  %s282_s0 = sld [smem:[#allocation2]]  ;;  %s245_s20 = smov [#allocation7]  }
   0xe   :  { %v46_v1 = vsel %vm45_vm0, %v43_v0, 0.0  ;;  %v49_v3 = vsel %vm45_vm0, %v44_v2, 0.0  ;;  %164 = vrcp.f32 %v244_v4  ;;  %s284_s1 = sld [smem:[#allocation2 + $0x1]]  ;;  %s141_s21 = sshll.u32 %s245_s20, 4  ;;  %s142_s21 = int_to_ptr.vmem [resolvable:$true] %s141_s21 }
   0xf   :  { %47 = vadd.xlane.f32.xlu0 %v46_v1  ;;  %s143_s24 = sshll.u32 %s300_s2, 4  ;;  %s144_s24 = int_to_ptr.hbm [resolvable:$true] %s143_s24 }
  0x13   :  { %v127_v56 = vstv %s282_s0 }
  0x14   :  { %v165_v5 = vpop.eup %164  ;;  %v132_v63 = vstv %s284_s1 }
  0x15   :  { %v53_v6 = vmul.f32 32.0, %v165_v5  ;;  %vm57_vm1 = vweird.f32 %v165_v5 }
  0x17   :  { %50 = vadd.xlane.f32.xlu0 %v49_v3  ;;  %v54_v7 = vsub.f32 1.0, %v53_v6 }
  0x19   :  { %v55_v8 = vmul.f32 %v165_v5, %v54_v7 }
  0x1b   :  { %v56_v9 = vadd.f32 %v165_v5, %v55_v8 }
  0x1d   :  { %v58_v10 = vsel %vm57_vm1, %v165_v5, %v56_v9 }
  0x82   :  { %v48_v11 = vpop.xlane.xlu0 %47 }
  0x83   :  { %v59_v12 = vmul.f32 %v58_v10, %v48_v11 }
  0x85   :  { %v272_v13 = vsub.f32 %v43_v0, %v59_v12 }
  0x87   :  { %v63_v14 = vmul.f32 %v272_v13, %v272_v13 }
  0x89   :  { %v65_v15 = vsel %vm45_vm0, %v63_v14, 0.0 }
  0x8a   :  { %66 = vadd.xlane.f32.xlu1 %v65_v15  ;;  %v51_v16 = vpop.xlane.xlu0 %50 }
  0x8b   :  { %v60_v17 = vmul.f32 %v58_v10, %v51_v16 }
  0x8d   :  { %v277_v18 = vsub.f32 %v44_v2, %v60_v17 }
  0x8f   :  { %v64_v19 = vmul.f32 %v277_v18, %v277_v18 }
  0x91   :  { %v68_v20 = vsel %vm45_vm0, %v64_v19, 0.0 }
  0x92   :  { %69 = vadd.xlane.f32.xlu1 %v68_v20 }
  0xfd   :  { %v67_v21 = vpop.xlane.xlu1 %66 }
  0xfe   :  { %v71_v22 = vmul.f32 0.032258064, %v67_v21 }
 0x100   :  { %166 = vrsqrt.f32 %v71_v22  ;;  %vm80_vm2 = vcmp.eq.f32.partialorder %v71_v22, inf  ;;  %v83_v35 = vand.u32 2147483648, %v71_v22  ;;  %vm82_vm3 = vcmp.eq.f32.partialorder %v71_v22, 0.0 }
 0x105   :  { %v70_v23 = vpop.xlane.xlu1 %69 }
 0x106   :  { %v167_v24 = vpop.eup %166  ;;  %v72_v25 = vmul.f32 0.032258064, %v70_v23 }
 0x107   :  { %v74_v26 = vmul.f32 %v167_v24, %v71_v22 }
 0x108   :  { %168 = vrsqrt.f32 %v72_v25  ;;  %vm92_vm4 = vcmp.eq.f32.partialorder %v72_v25, inf  ;;  %v95_v43 = vand.u32 2147483648, %v72_v25  ;;  %vm94_vm5 = vcmp.eq.f32.partialorder %v72_v25, 0.0 }
 0x109   :  { %v75_v27 = vmul.f32 %v167_v24, %v74_v26 }
 0x10b   :  { %v76_v28 = vmul.f32 0.5, %v75_v27 }
 0x10d   :  { %v77_v29 = vsub.f32 1.5, %v76_v28 }
 0x10e   :  { %v169_v30 = vpop.eup %168 }
 0x10f   :  { %v78_v31 = vmul.f32 %v167_v24, %v77_v29  ;;  %v86_v32 = vmul.f32 %v169_v30, %v72_v25 }
 0x111   :  { %v79_v33 = vmul.f32 %v78_v31, %v71_v22  ;;  %v87_v34 = vmul.f32 %v169_v30, %v86_v32 }
 0x113   :  { %v81_v36 = vsel %vm80_vm2, %v71_v22, %v79_v33  ;;  %v88_v37 = vmul.f32 0.5, %v87_v34 }
 0x114   :  { %v84_v38 = vsel %vm82_vm3, %v83_v35, %v81_v36 }
 0x115   :  { %v89_v39 = vsub.f32 1.5, %v88_v37  ;;  %v97_v40 = vadd.f32 1e-05, %v84_v38 }
 0x117   :  { %v90_v41 = vmul.f32 %v169_v30, %v89_v39  ;;  %170 = vrcp.f32 %v97_v40  ;;  %v110_v50 = vand.u32 2147483648, %v97_v40  ;;  %v108_v52 = vand.u32 2147483647, %v97_v40 }
 0x118   :  { %vm104_vm7 = vweird.f32 %v97_v40 }
 0x119   :  { %v91_v42 = vmul.f32 %v90_v41, %v72_v25  ;;  %v111_v55 = vor.u32 1.1754944e-38, %v110_v50  ;;  %vm109_vm9 = vcmp.eq.f32.partialorder %v108_v52, 8.507059e+37 }
 0x11b   :  { %v93_v44 = vsel %vm92_vm4, %v72_v25, %v91_v42 }
 0x11c   :  { %v96_v45 = vsel %vm94_vm5, %v95_v43, %v93_v44 }
 0x11d   :  { %v171_v46 = vpop.eup %170  ;;  %v98_v47 = vadd.f32 1e-05, %v96_v45 }
 0x11e   :  { %v100_v48 = vmul.f32 %v171_v46, %v97_v40  ;;  %vm105_vm6 = vweird.f32 %v171_v46 }
 0x11f   :  { %172 = vrcp.f32 %v98_v47  ;;  %vm106_vm8 = vmor %vm104_vm7, %vm105_vm6  ;;  %v124_v62 = vand.u32 2147483648, %v98_v47  ;;  %v122_v1 = vand.u32 2147483647, %v98_v47  ;;  %vm118_vm11 = vweird.f32 %v98_v47 }
 0x120   :  { %v101_v49 = vsub.f32 1.0, %v100_v48 }
 0x121   :  { %v125_v5 = vor.u32 1.1754944e-38, %v124_v62  ;;  %vm123_vm13 = vcmp.eq.f32.partialorder %v122_v1, 8.507059e+37 }
 0x122   :  { %v102_v51 = vmul.f32 %v171_v46, %v101_v49 }
 0x124   :  { %v103_v53 = vadd.f32 %v171_v46, %v102_v51 }
 0x125   :  { %v173_v54 = vpop.eup %172 }
 0x126   :  { %v107_v57 = vsel %vm106_vm8, %v171_v46, %v103_v53  ;;  %v114_v58 = vmul.f32 %v173_v54, %v98_v47  ;;  %vm119_vm10 = vweird.f32 %v173_v54 }
 0x127   :  { %v112_v59 = vsel %vm109_vm9, %v111_v55, %v107_v57  ;;  %vm120_vm12 = vmor %vm118_vm11, %vm119_vm10 }
 0x128   :  { %v115_v60 = vsub.f32 1.0, %v114_v58  ;;  %v128_v61 = vmul.f32 %v127_v56, %v112_v59 }
 0x12a   :  { %v116_v0 = vmul.f32 %v173_v54, %v115_v60  ;;  %v130_v2 = vmul.f32 %v128_v61, %v272_v13 }
 0x12c   :  { %v117_v3 = vadd.f32 %v173_v54, %v116_v0  ;;  %v133_v4 = vadd.f32 %v132_v63, %v130_v2 }
 0x12e   :  { %v121_v6 = vsel %vm120_vm12, %v173_v54, %v117_v3  ;;  %135 = vst.msk [vmem:[#allocation7] sm:$0xff] %vm45_vm0, %v133_v4 }
 0x12f   :  { %v126_v7 = vsel %vm123_vm13, %v125_v5, %v121_v6 }
 0x130   :  { %v129_v8 = vmul.f32 %v127_v56, %v126_v7 }
 0x132   :  { %v131_v9 = vmul.f32 %v129_v8, %v277_v18 }
 0x134   :  { %v134_v10 = vadd.f32 %v132_v63, %v131_v9 }
 0x136   :  { %136 = vst.msk [vmem:[#allocation7 + $0x8] sm:$0xff] %vm45_vm0, %v134_v10 }
 0x137   :  { %149 = dma.vmem_to_hbm [thread:$0]  %s142_s21, 256, %s144_s24, [#allocation4], %s242_s18, %s242_s18, %s243_s19  }
 0x138   :  { %238 = dma.done.wait [#allocation4], 256  }
 0x139   :  { %239 = vsyncadd [#allocation4], 4294967040 }
 0x13a   :  { %154 = vsyncpa [#allocation3], 1 }
 0x13b   :  { %155 = vsyncpa [#allocation4], 1 }
 0x13c   :  { %156 = vsyncpa [#allocation5], 1 }

</bundles_post_ra>
